<compile_context>
chip_gen: v7x
topology: tpu7x:2x2x1
jax: 0.10.0
libtpu: 0.0.40
codegen_flags: <defaults>
</compile_context>

<pallas_src>
import jax
import jax.numpy as jnp
import numpy as np
from jax.experimental import pallas as pl
from jax.experimental.pallas import tpu as pltpu


def _round_up(n, m):
    return ((n + m - 1) // m) * m


def _location_kernel(x_ref, w_ref, o_ref):
    """One row-tile grid step.

    x_ref: (tR, Cin)  bf16  packed im2col rows (+ ones bias column, zero pad)
    w_ref: (Cin, Dp)  bf16  block-diagonal fused conv*dense filter (+ bias rows)
    o_ref: (tR, Dp)   bf16  lane-dense output tile
    """
    o_ref[...] = jnp.dot(x_ref[...], w_ref[...],
                         preferred_element_type=jnp.float32).astype(o_ref.dtype)


def fuse_location_weights(conv_w, conv_b, dense_w):
    """Fold Conv1d(1->F, K, bias) + Linear(F->D, no bias) into one bf16 matrix.

    Hoist this out of the per-decoder-step hot path: it depends only on the
    (static) layer weights.

    conv_w: (F, 1, K); conv_b: (F,); dense_w: (D, F)
    Returns (w_block, meta):
      w_block: (Cin, Dp) bf16 with Cin = p*Kp and Dp = 128 (row-packed case)
               or round_up(D, 128).
      meta:    static python ints describing the packing.
    """
    F, c_in, K = conv_w.shape
    D = dense_w.shape[0]
    assert c_in == 1, "LocationLayer conv has a single input channel"
    # PyTorch padding=(K-1)//2 reproduces output length T only for odd K.
    assert K % 2 == 1, "LocationLayer requires an odd attention_kernel_size"

    wc = conv_w[:, 0, :].astype(jnp.float32)             # (F, K)
    wd = dense_w.astype(jnp.float32)                     # (D, F)
    w_fused = wc.T @ wd.T                                # (K, D)
    b_fused = conv_b.astype(jnp.float32) @ wd.T          # (D,)
    w_aug = jnp.concatenate([w_fused, b_fused[None, :]], axis=0)   # (K+1, D)

    Kp = _round_up(K + 1, 8)                             # sublane multiple
    w_aug = jnp.pad(w_aug, ((0, Kp - (K + 1)), (0, 0)))  # (Kp, D)

    if D < 128 and 128 % D == 0:
        # Pack p consecutive time-rows per output row: block-diagonal weight so
        # the matmul emits a 128-lane-dense output with no Dp>D padding bytes.
        p = 128 // D
        Dp = 128
        eye = jnp.eye(p, dtype=jnp.float32)
        # w_block[j*Kp + k, j*D + d] = w_aug[k, d]
        w_block = (eye[:, None, :, None] * w_aug[None, :, None, :]
                   ).reshape(p * Kp, p * D)
    else:
        p = 1
        Dp = _round_up(D, 128)                           # lane-dense width
        w_block = jnp.pad(w_aug, ((0, 0), (0, Dp - D)))

    meta = dict(K=K, D=D, p=p, Kp=Kp, Dp=Dp)
    return w_block.astype(jnp.bfloat16), meta


def location_layer_apply(x, w_block, meta, *, t_tile=2048):
    """x: (B, 1, T).  Returns (B, T, D) in bf16."""
    B, c_in, T = x.shape
    assert c_in == 1
    K, D, p, Kp, Dp = meta["K"], meta["D"], meta["p"], meta["Kp"], meta["Dp"]
    pad = (K - 1) // 2
    Cin = p * Kp

    rows = B * T
    rows_p = -(-rows // p)                    # packed rows needed
    t_tile = _round_up(max(t_tile, 8), 8)
    # Large tiles to amortize per-step overhead, but keep >= 2 grid steps when
    # there is enough work so both v7x TensorCores get a "parallel" step each.
    tR = max(8, min(t_tile, _round_up(-(-rows_p // 2), 8)))
    Rp = _round_up(rows_p, tR)                # packed rows after padding
    R = Rp * p                                # unpacked rows after padding

    # --- wrapper-side layout glue (bf16 to halve the streamed bytes) ---------
    xrow = x[:, 0, :].astype(jnp.bfloat16)                          # (B, T)
    xp = jnp.pad(xrow, ((0, 0), (pad, pad)))                        # (B, T+K-1)
    # im2col: x_col[b, t, k] = xp[b, t + k]   (per-batch, so no cross-batch bleed)
    # TODO(synk): the full fix for this Kp-amplified HBM im2col is to pass the
    # raw padded row with memory_space=pl.ANY and build the K shifted columns
    # in-kernel from manually DMA'd halo windows; kept the (bf16) wrapper
    # im2col here for robustness.
    x_col = jnp.stack([xp[:, k:k + T] for k in range(K)], axis=-1)  # (B, T, K)
    ones = jnp.ones((B, T, 1), jnp.bfloat16)                        # bias column
    x_aug = jnp.concatenate([x_col, ones], axis=-1)                 # (B, T, K+1)
    x_aug = jnp.pad(x_aug, ((0, 0), (0, 0), (0, Kp - (K + 1))))     # (B, T, Kp)
    x_aug = x_aug.reshape(rows, Kp)
    if R > rows:
        x_aug = jnp.pad(x_aug, ((0, R - rows), (0, 0)))
    x_packed = x_aug.reshape(Rp, Cin)        # free row-major reshape (bitcast)

    grid = (Rp // tR,)
    out = pl.pallas_call(
        _location_kernel,
        out_shape=jax.ShapeDtypeStruct((Rp, Dp), jnp.bfloat16),
        grid=grid,
        in_specs=[
            pl.BlockSpec((tR, Cin), lambda i: (i, 0)),
            # fused weights: same tiny block every step -> stays VMEM-resident
            pl.BlockSpec((Cin, Dp), lambda i: (0, 0)),
        ],
        out_specs=pl.BlockSpec((tR, Dp), lambda i: (i, 0)),
        compiler_params=pltpu.CompilerParams(
            dimension_semantics=("parallel",),
            vmem_limit_bytes=32 * 1024 * 1024,
        ),
    )(x_packed, w_block)

    # Undo the row packing with a free row-major reshape; slice only if padded.
    if p > 1:
        out = out.reshape(R, D)
    elif Dp != D:
        out = out[:, :D]
    if R != rows:
        out = out[:rows]
    return out.reshape(B, T, D)


def location_layer_forward(x, conv_w, conv_b, dense_w, *, t_tile=2048):
    """Convenience wrapper.  When the layer is applied repeatedly with the same
    weights (Tacotron decoder loop), call fuse_location_weights() once and
    reuse (w_block, meta) with location_layer_apply()."""
    w_block, meta = fuse_location_weights(conv_w, conv_b, dense_w)
    return location_layer_apply(x, w_block, meta, t_tile=t_tile)


def _reference(x, conv_w, conv_b, dense_w):
    """Pure-JAX f32 reference matching torch Conv1d + transpose + Linear(bias=False)."""
    B, _, T = x.shape
    F, _, K = conv_w.shape
    pad = (K - 1) // 2
    xp = jnp.pad(x[:, 0, :].astype(jnp.float32), ((0, 0), (pad, pad)))
    conv_out = jnp.zeros((B, F, T), jnp.float32)
    for k in range(K):
        conv_out = conv_out + xp[:, None, k:k + T] * conv_w[None, :, 0, k][:, :, None]
    conv_out = conv_out + conv_b[None, :, None]
    proc = jnp.transpose(conv_out, (0, 2, 1))                    # (B, T, F)
    return jnp.einsum("btf,df->btd", proc, dense_w.astype(jnp.float32))


def _check(B, T, F, K, D, seed, fwd):
    key = jax.random.PRNGKey(seed)
    k1, k2, k3, k4 = jax.random.split(key, 4)
    x = jax.random.normal(k1, (B, 1, T), jnp.float32)
    conv_w = 0.1 * jax.random.normal(k2, (F, 1, K), jnp.float32)
    conv_b = 0.1 * jax.random.normal(k3, (F,), jnp.float32)
    dense_w = 0.1 * jax.random.normal(k4, (D, F), jnp.float32)

    out = jax.block_until_ready(fwd(x, conv_w, conv_b, dense_w))
    ref = _reference(x, conv_w, conv_b, dense_w)
    assert out.shape == (B, T, D)
    assert out.dtype == jnp.bfloat16
    # bf16-streamed I/O -> tolerance loosened vs. the f32 version.
    np.testing.assert_allclose(np.asarray(out.astype(jnp.float32)),
                               np.asarray(ref), rtol=2e-2, atol=2e-2)


if __name__ == "__main__":
    fwd = jax.jit(location_layer_forward)
    # Small shapes consistent with the module:
    #   B=2, T=16, attention_n_filters=8, attention_kernel_size=3, attention_dim=32
    # -> exercises the D<128 row-packing path (p=4 rows per 128-lane output row).
    _check(B=2, T=16, F=8, K=3, D=32, seed=0, fwd=fwd)
    # Tacotron2-like shapes: K=31 fused filter, D=128 lane-dense path, and two
    # 1024-row "parallel" grid steps (keeps both v7x TensorCores busy) with no
    # post-call compaction slice.
    _check(B=2, T=1024, F=32, K=31, D=128, seed=1, fwd=fwd)
    print("KERNEL_OK")
</pallas_src>

<mosaic_0001>
module attributes {stable_mosaic.version = 11 : i64} {
  func.func @_location_kernel(%arg0: i32, %arg1: memref<8x32xbf16, #tpu.memory_space<vmem>>, %arg2: memref<32x128xbf16, #tpu.memory_space<vmem>>, %arg3: memref<8x128xbf16, #tpu.memory_space<vmem>>) attributes {dimension_semantics = [#tpu.dimension_semantics<parallel>], iteration_bounds = array<i64: 1>, scalar_prefetch = 0 : i64, scratch_operands = 0 : i64, tpu.core_type = #tpu.core_type<tc>, window_params = [{transform_indices = @transform_0, window_bounds = array<i64: 8, 32>}, {pipeline_mode = #tpu.pipeline_mode<synchronous>, transform_indices = @transform_1, window_bounds = array<i64: 32, 128>}, {transform_indices = @transform_2, window_bounds = array<i64: 8, 128>}]} {
    %c0 = arith.constant 0 : index
    %c0_0 = arith.constant 0 : index
    %0 = vector.load %arg1[%c0, %c0_0] : memref<8x32xbf16, #tpu.memory_space<vmem>>, vector<8x32xbf16>
    %c0_1 = arith.constant 0 : index
    %c0_2 = arith.constant 0 : index
    %1 = vector.load %arg2[%c0_1, %c0_2] : memref<32x128xbf16, #tpu.memory_space<vmem>>, vector<32x128xbf16>
    %cst = arith.constant dense<0.000000e+00> : vector<8x128xf32>
    %2 = tpu.matmul %0, %1, %cst {dimension_numbers = #tpu.dot_dimension_numbers<[1], [0], [0], [1], [0, 0, 1, 1], [], []>} : vector<8x32xbf16>, vector<32x128xbf16>, vector<8x128xf32> -> vector<8x128xf32>
    %3 = arith.truncf %2 : vector<8x128xf32> to vector<8x128xbf16>
    %c0_3 = arith.constant 0 : index
    %c0_4 = arith.constant 0 : index
    %4 = vector.load %arg3[%c0_3, %c0_4] : memref<8x128xbf16, #tpu.memory_space<vmem>>, vector<8x128xbf16>
    tpu.vector_store %arg3[%c0_3, %c0_4], %3 {strides = array<i32>} : memref<8x128xbf16, #tpu.memory_space<vmem>>, vector<8x128xbf16>,
    return
  }
  func.func @transform_0(%arg0: i32) -> (i32, i32) {
    %c0_i32 = arith.constant 0 : i32
    %c0_i32_0 = arith.constant 0 : i32
    return %arg0, %c0_i32 : i32, i32
  }
  func.func @transform_1(%arg0: i32) -> (i32, i32) {
    %c0_i32 = arith.constant 0 : i32
    %c0_i32_0 = arith.constant 0 : i32
    %c0_i32_1 = arith.constant 0 : i32
    return %c0_i32, %c0_i32_0 : i32, i32
  }
  func.func @transform_2(%arg0: i32) -> (i32, i32) {
    %c0_i32 = arith.constant 0 : i32
    %c0_i32_0 = arith.constant 0 : i32
    return %arg0, %c0_i32 : i32, i32
  }
}

</mosaic_0001>

<bundles_post_ra>
// kernel: location_layer_forward.1
= control target key start
LH: loop header
LB: loop body
LE: loop exit
PB: predicated region body
PF: predicated region fallthrough
CT: control target
= control target key end

     0   :  { %v97_v0 = vmov 0.0   ;;  %vm98_vm0 = vmmov 0   ;;  %vm29_vm1 = vcmask 261120   ;;  %s126_s1 = inlined_call_operand.vmem [shape: bf16[32,128], index: 1, kind: input, shape index: {}]   ;;  %s127_s0 = inlined_call_operand.vmem [shape: bf16[8,32], index: 0, kind: input, shape index: {}]   ;;  %s128_s2 = inlined_call_operand.vmem [shape: bf16[8,128], index: 2, kind: output, shape index: {}]  }
   0x1   :  { %85 = vmatprep.subr.bf16.mxu0 %v97_v0  ;;  %v95_v1 = vld [vmem:[%s126_s1] sm:$0xff]   ;;  %89 = vmatprep.mubr.msk.bf16.mxu0 %vm98_vm0, %v97_v0  ;;  %v96_v2 = vld [vmem:[%s126_s1 + $0x8] sm:$0xff]  }
   0x2   :  { %86 = vmatpush3.bf16.msra.mxu0 %v95_v1  ;;  %v12_v3 = vld [vmem:[%s127_s0] sm:$0xf] }
   0x3   :  { %87 = vmatprep.subr.bf16.mxu0 %v97_v0 }
   0x6   :  { %88 = vmatpush3.bf16.msra.mxu0 %v96_v2 }
   0x9   :  { %90 = vmatmul.mubr.msk.bf16.vlgmr.msra.gmra.mrb[0].mxu0 %vm29_vm1, %v12_v3 }
  0xdc   :  { %v67_v4 = vpop.f32.mrb[0].mxu0 }
  0xdd   :  { %v73_v5 = vpack.c.bf16 %v67_v4, %v67_v4  ;;  %v91_v6 = vpop.f32.mrb[1].mxu0 }
  0xde   :  { %v70_v7 = vpop.f32.mrb[2].mxu0 }
  0xdf   :  { %74 = vst [vmem:[%s128_s2] sm:$0xf] %v73_v5  ;;  %v92_v8 = vpop.f32.mrb[3].mxu0 }

</bundles_post_ra>
